<compile_context>
chip_gen: v6e
topology: v6e:2x2x1
jax: 0.10.0
libtpu: 0.0.40
codegen_flags: <defaults>
</compile_context>

<pallas_src>
import functools

import jax
import jax.numpy as jnp
from jax.experimental import pallas as pl
from jax.experimental.pallas import tpu as pltpu


def _shift_kernel(x_ref, o_ref, *, shift):
    # x_ref / o_ref: (tile_rows, lane) VMEM tiles. `shift` is a Python float
    # baked in as a constant (weakly typed, so the add stays in x's dtype).
    o_ref[...] = x_ref[...] + shift


def shift_forward(x, shift):
    """x: any shape. shift: static Python scalar. Returns x + shift."""
    orig_shape = x.shape
    dtype = x.dtype

    flat = x.reshape(-1)
    n = flat.shape[0]

    # Pick the widest lane-dense last dim (multiple of 128) that divides n so
    # the aligned case avoids any pad/slice HBM traffic. Fallback: pad to 128.
    lane = None
    for cand in (1024, 512, 256, 128):
        if n % cand == 0:
            lane = cand
            break
    pad = 0
    if lane is None:
        lane = 128
        pad = (-n) % lane
        flat = jnp.pad(flat, (0, pad))

    rows = flat.shape[0] // lane
    x2d = flat.reshape(rows, lane)

    # Large block to amortize the ~600-cycle per-grid-step pipeline overhead.
    # Cap each block at ~2 MiB; keep tile_rows a multiple of 8 (sublane) when
    # it is not the full row extent. Ragged tail blocks are masked by Pallas.
    itemsize = jnp.dtype(dtype).itemsize
    max_block_bytes = 2 * 1024 * 1024
    cap_rows = max(8, (max_block_bytes // (lane * itemsize)) // 8 * 8)
    tile_rows = rows if rows <= cap_rows else cap_rows

    grid = (pl.cdiv(rows, tile_rows),)

    kernel = functools.partial(_shift_kernel, shift=float(shift))

    out2d = pl.pallas_call(
        kernel,
        out_shape=jax.ShapeDtypeStruct((rows, lane), dtype),
        grid=grid,
        in_specs=[pl.BlockSpec((tile_rows, lane), lambda i: (i, 0))],
        out_specs=pl.BlockSpec((tile_rows, lane), lambda i: (i, 0)),
        compiler_params=pltpu.CompilerParams(
            dimension_semantics=("parallel",),  # megacore split on v7x
        ),
        cost_estimate=pl.CostEstimate(
            flops=n,
            transcendentals=0,
            bytes_accessed=2 * n * itemsize,
        ),
    )(x2d)

    out_flat = out2d.reshape(-1)
    if pad:
        out_flat = out_flat[:n]
    return out_flat.reshape(orig_shape)


if __name__ == "__main__":
    key = jax.random.PRNGKey(0)
    # The module's __init__ takes a scalar shift; use a deterministic value.
    shift_value = 0.5

    x = jax.random.normal(key, (2, 4, 16, 16), dtype=jnp.float32)  # NCHW

    out = shift_forward(x, shift_value)
    jax.block_until_ready(out)

    # Correctness check against the trivial reference.
    ref = x + shift_value
    assert out.shape == x.shape and out.dtype == x.dtype
    assert jnp.allclose(out, ref, atol=1e-6, rtol=1e-6)

    print("KERNEL_OK")
</pallas_src>

<mosaic_0001>
module attributes {stable_mosaic.version = 11 : i64} {
  func.func @_shift_kernel(%arg0: i32, %arg1: memref<2x1024xf32, #tpu.memory_space<vmem>>, %arg2: memref<2x1024xf32, #tpu.memory_space<vmem>>) attributes {dimension_semantics = [#tpu.dimension_semantics<parallel>], iteration_bounds = array<i64: 1>, scalar_prefetch = 0 : i64, scratch_operands = 0 : i64, tpu.core_type = #tpu.core_type<tc>, window_params = [{transform_indices = @transform_0, window_bounds = array<i64: 2, 1024>}, {transform_indices = @transform_1, window_bounds = array<i64: 2, 1024>}]} {
    %c0 = arith.constant 0 : index
    %c0_0 = arith.constant 0 : index
    %0 = vector.load %arg1[%c0, %c0_0] : memref<2x1024xf32, #tpu.memory_space<vmem>>, vector<2x1024xf32>
    %cst = arith.constant 5.000000e-01 : f32
    %1 = vector.broadcast %cst : f32 to vector<2x1024xf32>
    %2 = arith.addf %0, %1 : vector<2x1024xf32>
    %c0_1 = arith.constant 0 : index
    %c0_2 = arith.constant 0 : index
    %3 = vector.load %arg2[%c0_1, %c0_2] : memref<2x1024xf32, #tpu.memory_space<vmem>>, vector<2x1024xf32>
    tpu.vector_store %arg2[%c0_1, %c0_2], %2 {strides = array<i32>} : memref<2x1024xf32, #tpu.memory_space<vmem>>, vector<2x1024xf32>,
    return
  }
  func.func @transform_0(%arg0: i32) -> (i32, i32) {
    %c0_i32 = arith.constant 0 : i32
    %c0_i32_0 = arith.constant 0 : i32
    return %arg0, %c0_i32 : i32, i32
  }
  func.func @transform_1(%arg0: i32) -> (i32, i32) {
    %c0_i32 = arith.constant 0 : i32
    %c0_i32_0 = arith.constant 0 : i32
    return %arg0, %c0_i32 : i32, i32
  }
}

</mosaic_0001>

<bundles_post_ra>
// kernel: tpu_custom_call.1
= control target key start
LH: loop header
LB: loop body
LE: loop exit
PB: predicated region body
PF: predicated region fallthrough
CT: control target
= control target key end

     0   :  { %6 = vsyncpa [#allocation3], 0  ;;  %s106_s0 = inlined_call_operand.hbm [shape: f32[2,1024], index: 0, kind: input, shape index: {}]   ;;  %s107_s1 = inlined_call_operand.hbm [shape: f32[2,1024], index: 1, kind: output, shape index: {}]  }
   0x1   :  { %7 = vsyncpa [#allocation4], 0  ;;  %s88_s6 = smov [#allocation2]  }
   0x2   :  { %s14_s7 = sshll.u32 %s88_s6, 4  ;;  %s15_s7 = int_to_ptr.vmem [resolvable:$true] %s14_s7 }
   0x3   :  { %s52_s8 = scalar_lea.vmem %s15_s7, 256  ;;  %p57_p1 = scmp.lt.s32.totalorder %s15_s7, %s15_s7 }
   0x4   :  { %p53_p0 = scmp.ne.s32.totalorder %s15_s7, %s52_s8  ;;  %p58_p2 = scmp.lt.s32.totalorder %s52_s8, %s52_s8 }
   0x6   :  { %p59_p3 = por %p58_p2, %p57_p1 }
   0x8   :  { %p60_p4 = pnand %p59_p3, %p53_p0 }
   0xa   :  { %63 = shalt.err (!%p60_p4)
}
   0xb   :  { %17 = dma.hbm_to_vmem [thread:$0]  %s106_s0, 256, %s15_s7, [#allocation3]  }
   0xc   :  { %84 = dma.done.wait [#allocation3], 256  }
   0xd   :  { %85 = vsyncadd [#allocation3], 4294967040  ;;  %s89_s11 = smov [#allocation5]   ;;  %v21_v0 = vld [vmem:[#allocation2] sm:$0xff]  ;;  %v22_v1 = vld [vmem:[#allocation2 + $0x8] sm:$0xff] }
   0xe   :  { %s33_s12 = sshll.u32 %s89_s11, 4  ;;  %v23_v2 = vadd.f32 0.5, %v21_v0  ;;  %v24_v3 = vadd.f32 0.5, %v22_v1  ;;  %s34_s12 = int_to_ptr.vmem [resolvable:$true] %s33_s12 }
   0xf   :  { %s64_s13 = scalar_lea.vmem %s34_s12, 256  ;;  %p69_p6 = scmp.lt.s32.totalorder %s34_s12, %s34_s12 }
  0x10   :  { %25 = vst [vmem:[#allocation5] sm:$0xff] %v23_v2  ;;  %26 = vst [vmem:[#allocation5 + $0x8] sm:$0xff] %v24_v3  ;;  %p65_p5 = scmp.ne.s32.totalorder %s34_s12, %s64_s13  ;;  %p70_p7 = scmp.lt.s32.totalorder %s64_s13, %s64_s13 }
  0x12   :  { %p71_p8 = por %p70_p7, %p69_p6 }
  0x14   :  { %p72_p9 = pnand %p71_p8, %p65_p5 }
  0x16   :  { %75 = shalt.err (!%p72_p9)
}
  0x17   :  { %36 = dma.vmem_to_hbm [thread:$0]  %s34_s12, 256, %s107_s1, [#allocation4]  }
  0x18   :  { %86 = dma.done.wait [#allocation4], 256  }
  0x19   :  { %87 = vsyncadd [#allocation4], 4294967040 }
  0x1a   :  { %40 = vsyncpa [#allocation3], 1 }
  0x1b   :  { %41 = vsyncpa [#allocation4], 1 }

</bundles_post_ra>
